<compile_context>
chip_gen: v7x
topology: tpu7x:2x2x1
jax: 0.10.0
libtpu: 0.0.40
codegen_flags: <defaults>
</compile_context>

<pallas_src>
import jax
import jax.numpy as jnp
from jax import lax
from jax.experimental import pallas as pl
from jax.experimental.pallas import tpu as pltpu


# --------------------------------------------------------------------------- #
# Kernels
# --------------------------------------------------------------------------- #
def _cgp_matmul_kernel(a_ref, x_ref, o_ref):
    # o = A_fold @ x  (single lane-dense MXU matmul; drift already folded in A)
    o_ref[...] = jnp.dot(
        a_ref[...], x_ref[...],
        preferred_element_type=jnp.float32,
        precision=lax.Precision.HIGHEST,
    ).astype(o_ref.dtype)


def _cgp_native_kernel(a_ref, x_ref, o_ref):
    # x_ref/o_ref: (bt, V, TL) in the native NCVL layout; per-batch matmuls.
    a = a_ref[...]                                   # (V, V), resident
    bt = x_ref.shape[0]
    for b in range(bt):                              # static unroll (bt <= 16)
        o_ref[b, :, :] = jnp.dot(
            a, x_ref[b, :, :],
            preferred_element_type=jnp.float32,
            precision=lax.Precision.HIGHEST,
        ).astype(o_ref.dtype)


# --------------------------------------------------------------------------- #
# Tiling heuristics
# --------------------------------------------------------------------------- #
def _choose_lane_tile(m: int, v: int, itemsize: int) -> int:
    """Lane tile for the (V, M) fold path: multiple of 128, sized for >= ~8
    pipeline steps (each >= 512 lanes / >= 32 KiB DMA when the problem allows)
    while 2 bufs * (x tile + out tile) stays under ~8 MiB (v7x-safe)."""
    if m <= 128:
        return m                                     # full-extent slab (allowed)
    budget_bytes = 8 * 1024 * 1024
    max_tm = max(128, (budget_bytes // (4 * v * itemsize)) // 128 * 128)
    target = ((pl.cdiv(m, 8) + 127) // 128) * 128    # aim for >= 8 grid steps
    if m >= 8 * 512:
        target = max(target, 512)                    # >= 32 KiB per DMA chunk
    return max(128, min(max_tm, target))


def _choose_native_tiles(b: int, v: int, l: int, itemsize: int):
    """(batch tile, lane tile) for the native path (requires l % 128 == 0)."""
    tl = min(l, 512)                                 # multiple of 128
    budget_elems = (8 * 1024 * 1024) // (4 * itemsize)   # 2 bufs * (x + out)
    bt = max(1, min(16, b, budget_elems // (v * tl)))
    return bt, tl


# --------------------------------------------------------------------------- #
# Wrappers
# --------------------------------------------------------------------------- #
def fold_adjacency(adj: jax.Array, alpha: float = 1.0) -> jax.Array:
    """A_fold = 0.5*alpha*(D^{-1/2}(A+I)D^{-1/2} - I).  Precompute once per
    ODE solve if adj/alpha are constant across drift evaluations."""
    V = adj.shape[0]
    eye = jnp.eye(V, dtype=jnp.float32)
    adj_i = adj.astype(jnp.float32) + eye
    d = adj_i.sum(axis=1)
    d_inv_sqrt = jnp.power(d, -0.5)
    adj_norm = d_inv_sqrt[:, None] * adj_i * d_inv_sqrt[None, :]
    return (0.5 * float(alpha)) * (adj_norm - eye)


def _cgp_native(a_fold: jax.Array, x: jax.Array) -> jax.Array:
    """No-relayout path (L % 128 == 0): grid over (N*C, L) in native layout."""
    N, C, V, L = x.shape
    B = N * C
    x3 = x.reshape(B, V, L)                          # free reshape (leading dims)
    bt, tl = _choose_native_tiles(B, V, L, 4)
    grid = (pl.cdiv(B, bt), pl.cdiv(L, tl))
    out = pl.pallas_call(
        _cgp_native_kernel,
        out_shape=jax.ShapeDtypeStruct((B, V, L), jnp.float32),
        grid_spec=pltpu.PrefetchScalarGridSpec(
            num_scalar_prefetch=0,
            grid=grid,
            in_specs=[
                pl.BlockSpec((V, V), lambda i, j: (0, 0)),        # A_fold resident
                pl.BlockSpec((bt, V, tl), lambda i, j: (i, 0, j)),
            ],
            out_specs=pl.BlockSpec((bt, V, tl), lambda i, j: (i, 0, j)),
        ),
        compiler_params=pltpu.CompilerParams(
            dimension_semantics=("parallel", "parallel"),
            vmem_limit_bytes=32 * 1024 * 1024,
        ),
    )(a_fold, x3)
    return out.reshape(N, C, V, L)


def _cgp_lane_fold(a_fold: jax.Array, x: jax.Array) -> jax.Array:
    """Lane-fold path (small / ragged L): relayout to (V, N*C*L), one matmul."""
    N, C, V, L = x.shape
    M = N * C * L
    xt = jnp.transpose(x, (2, 0, 1, 3)).reshape(V, M)
    tm = _choose_lane_tile(M, V, 4)
    grid = (pl.cdiv(M, tm),)
    out = pl.pallas_call(
        _cgp_matmul_kernel,
        out_shape=jax.ShapeDtypeStruct((V, M), jnp.float32),
        grid_spec=pltpu.PrefetchScalarGridSpec(
            num_scalar_prefetch=0,
            grid=grid,
            in_specs=[
                pl.BlockSpec((V, V), lambda j: (0, 0)),           # A_fold resident
                pl.BlockSpec((V, tm), lambda j: (0, j)),          # lane-dense x slab
            ],
            out_specs=pl.BlockSpec((V, tm), lambda j: (0, j)),
        ),
        compiler_params=pltpu.CompilerParams(
            dimension_semantics=("parallel",),
            vmem_limit_bytes=32 * 1024 * 1024,
        ),
    )(a_fold, xt)
    return jnp.transpose(out.reshape(V, N, C, L), (1, 2, 0, 3))


def cgp_func(x: jax.Array, adj: jax.Array = None, alpha: float = 1.0,
             *, a_fold: jax.Array = None) -> jax.Array:
    """Pallas implementation of CGPFunc.forward(t, x).

    x:      (N, C, V, L)  -- NCWL, nodes on axis 2
    adj:    (V, V)        -- raw adjacency (self-loop added here, like the module)
    a_fold: optional precomputed fold_adjacency(adj, alpha) (hoist per solve).
    """
    N, C, V, L = x.shape
    if a_fold is None:
        assert adj is not None and adj.shape == (V, V)
        a_fold = fold_adjacency(adj, alpha)
    a_fold = a_fold.astype(jnp.float32)
    xf = x.astype(jnp.float32)

    if L % 128 == 0:
        out = _cgp_native(a_fold, xf)                # zero-relayout path
    else:
        out = _cgp_lane_fold(a_fold, xf)             # lane-dense fold path
    return out.astype(x.dtype)


def cgp_func_ref(x: jax.Array, adj: jax.Array, alpha: float = 1.0) -> jax.Array:
    """Pure-JAX reference mirroring the PyTorch forward exactly (f32 math)."""
    V = adj.shape[0]
    hi = lax.Precision.HIGHEST
    adj_i = adj + jnp.eye(V, dtype=adj.dtype)
    d = adj_i.sum(axis=1)
    _d = jnp.diag(jnp.power(d, -0.5))
    adj_norm = jnp.matmul(jnp.matmul(_d, adj_i, precision=hi), _d, precision=hi)
    ax = jnp.einsum('ncwl,vw->ncvl', x, adj_norm, precision=hi)
    return 0.5 * alpha * (ax - x)


if __name__ == "__main__":
    key = jax.random.PRNGKey(0)
    k_x, k_a, k_x2 = jax.random.split(key, 3)

    # Shapes consistent with the module: batch=2, channels=4, num_nodes V=16.
    N, C, V = 2, 4, 16
    # Non-negative adjacency so the degree normalization is well defined.
    adj = jax.random.uniform(k_a, (V, V), dtype=jnp.float32)
    alpha = 1.0

    # Case 1: small ragged seq length (L=16) -> lane-fold path.
    L = 16
    x = jax.random.normal(k_x, (N, C, V, L), dtype=jnp.float32)
    out = jax.block_until_ready(cgp_func(x, adj, alpha=alpha))
    ref = cgp_func_ref(x, adj, alpha=alpha)
    assert out.shape == (N, C, V, L)
    assert jnp.allclose(out, ref, atol=1e-5, rtol=1e-5), (
        float(jnp.max(jnp.abs(out - ref))))

    # Case 2: L multiple of 128 -> zero-relayout native-layout path.
    L2 = 128
    x2 = jax.random.normal(k_x2, (N, C, V, L2), dtype=jnp.float32)
    out2 = jax.block_until_ready(cgp_func(x2, adj, alpha=alpha))
    ref2 = cgp_func_ref(x2, adj, alpha=alpha)
    assert out2.shape == (N, C, V, L2)
    assert jnp.allclose(out2, ref2, atol=1e-5, rtol=1e-5), (
        float(jnp.max(jnp.abs(out2 - ref2))))

    print("KERNEL_OK")
</pallas_src>

<mosaic_0001>
module attributes {stable_mosaic.version = 11 : i64} {
  func.func @_cgp_matmul_kernel(%arg0: i32, %arg1: memref<16x16xf32, #tpu.memory_space<vmem>>, %arg2: memref<16x128xf32, #tpu.memory_space<vmem>>, %arg3: memref<16x128xf32, #tpu.memory_space<vmem>>) attributes {dimension_semantics = [#tpu.dimension_semantics<parallel>], iteration_bounds = array<i64: 1>, scalar_prefetch = 0 : i64, scratch_operands = 0 : i64, tpu.core_type = #tpu.core_type<tc>, window_params = [{pipeline_mode = #tpu.pipeline_mode<synchronous>, transform_indices = @transform_0, window_bounds = array<i64: 16, 16>}, {transform_indices = @transform_1, window_bounds = array<i64: 16, 128>}, {transform_indices = @transform_2, window_bounds = array<i64: 16, 128>}]} {
    %c0 = arith.constant 0 : index
    %c0_0 = arith.constant 0 : index
    %0 = vector.load %arg1[%c0, %c0_0] : memref<16x16xf32, #tpu.memory_space<vmem>>, vector<16x16xf32>
    %c0_1 = arith.constant 0 : index
    %c0_2 = arith.constant 0 : index
    %1 = vector.load %arg2[%c0_1, %c0_2] : memref<16x128xf32, #tpu.memory_space<vmem>>, vector<16x128xf32>
    %cst = arith.constant dense<0.000000e+00> : vector<16x128xf32>
    %2 = tpu.matmul %0, %1, %cst {dimension_numbers = #tpu.dot_dimension_numbers<[1], [0], [0], [1], [0, 0, 1, 1], [], []>, precision = #tpu.contract_precision<fp32>} : vector<16x16xf32>, vector<16x128xf32>, vector<16x128xf32> -> vector<16x128xf32>
    %c0_3 = arith.constant 0 : index
    %c0_4 = arith.constant 0 : index
    %3 = vector.load %arg3[%c0_3, %c0_4] : memref<16x128xf32, #tpu.memory_space<vmem>>, vector<16x128xf32>
    tpu.vector_store %arg3[%c0_3, %c0_4], %2 {strides = array<i32>} : memref<16x128xf32, #tpu.memory_space<vmem>>, vector<16x128xf32>,
    return
  }
  func.func @transform_0(%arg0: i32) -> (i32, i32) {
    %c0_i32 = arith.constant 0 : i32
    %c0_i32_0 = arith.constant 0 : i32
    %c0_i32_1 = arith.constant 0 : i32
    return %c0_i32, %c0_i32_0 : i32, i32
  }
  func.func @transform_1(%arg0: i32) -> (i32, i32) {
    %c0_i32 = arith.constant 0 : i32
    %c0_i32_0 = arith.constant 0 : i32
    return %c0_i32, %arg0 : i32, i32
  }
  func.func @transform_2(%arg0: i32) -> (i32, i32) {
    %c0_i32 = arith.constant 0 : i32
    %c0_i32_0 = arith.constant 0 : i32
    return %c0_i32, %arg0 : i32, i32
  }
}

</mosaic_0001>

<bundles_post_ra>
// kernel: tpu_custom_call.1
= control target key start
LH: loop header
LB: loop body
LE: loop exit
PB: predicated region body
PF: predicated region fallthrough
CT: control target
= control target key end

     0   :  { %7 = vsyncpa [#allocation3], 0  ;;  %s815_s0 = inlined_call_operand.hbm [shape: f32[16,16], index: 0, kind: input, shape index: {}]   ;;  %s816_s1 = inlined_call_operand.hbm [shape: f32[16,128], index: 1, kind: input, shape index: {}]   ;;  %s817_s2 = inlined_call_operand.hbm [shape: f32[16,128], index: 2, kind: output, shape index: {}]  }
   0x1   :  { %8 = vsyncpa [#allocation6], 0 }
   0x2   :  { %9 = vsyncpa [#allocation4], 0  ;;  %s750_s9 = smov [#allocation2]   ;;  %s678_s13 = scalar_lea.hbm %s815_s0, 256 }
   0x3   :  { %s15_s10 = sshll.u32 %s750_s9, 4  ;;  %p679_p0 = scmp.ne.s32.totalorder %s815_s0, %s678_s13  ;;  %s16_s10 = int_to_ptr.vmem [resolvable:$true] %s15_s10 }
   0x4   :  { %p682_p1 = scmp.lt.u32.totalorder %s678_s13, %s815_s0 }
   0x6   :  { %p684_p2 = pnand %p682_p1, %p679_p0 }
   0x8   :  { %687 = shalt.err (!%p684_p2)
}
   0x9   :  { %s688_s18 = scalar_lea.vmem %s16_s10, 256  ;;  %p693_p4 = scmp.lt.s32.totalorder %s16_s10, %s16_s10 }
   0xa   :  { %p689_p3 = scmp.ne.s32.totalorder %s16_s10, %s688_s18  ;;  %p694_p5 = scmp.lt.s32.totalorder %s688_s18, %s688_s18 }
   0xc   :  { %p695_p6 = por %p694_p5, %p693_p4 }
   0xe   :  { %p696_p7 = pnand %p695_p6, %p689_p3 }
  0x10   :  { %699 = shalt.err (!%p696_p7)
}
  0x11   :  { %s751_s19 = smov 128   ;;  %s752_s20 = smov 8  }
  0x12   :  { %21 = dma.hbm_to_vmem [thread:$0]  %s815_s0, 256, %s16_s10, [#allocation3], %s751_s19, %s751_s19, %s752_s20  }
  0x13   :  { %s753_s23 = smov [#allocation5]   ;;  %s700_s27 = scalar_lea.hbm %s816_s1, 256 }
  0x14   :  { %s27_s24 = sshll.u32 %s753_s23, 4  ;;  %p701_p8 = scmp.ne.s32.totalorder %s816_s1, %s700_s27  ;;  %s28_s24 = int_to_ptr.vmem [resolvable:$true] %s27_s24 }
  0x15   :  { %p704_p9 = scmp.lt.u32.totalorder %s700_s27, %s816_s1 }
  0x17   :  { %p706_p10 = pnand %p704_p9, %p701_p8 }
  0x19   :  { %709 = shalt.err (!%p706_p10)
}
  0x1a   :  { %s710_s4 = scalar_lea.vmem %s28_s24, 256  ;;  %p715_p12 = scmp.lt.s32.totalorder %s28_s24, %s28_s24 }
  0x1b   :  { %p711_p11 = scmp.ne.s32.totalorder %s28_s24, %s710_s4  ;;  %p716_p13 = scmp.lt.s32.totalorder %s710_s4, %s710_s4 }
  0x1d   :  { %p717_p0 = por %p716_p13, %p715_p12 }
  0x1f   :  { %p718_p1 = pnand %p717_p0, %p711_p11 }
  0x21   :  { %721 = shalt.err (!%p718_p1)
}
  0x22   :  { %33 = dma.hbm_to_vmem [thread:$0]  %s816_s1, 256, %s28_s24, [#allocation6], %s751_s19, %s751_s19, %s752_s20  }
  0x23   :  { %744 = dma.done.wait [#allocation3], 256  }
  0x24   :  { %745 = vsyncadd [#allocation3], 4294967040 }
  0x25   :  { %746 = dma.done.wait [#allocation6], 256  }
  0x26   :  { %747 = vsyncadd [#allocation6], 4294967040  ;;  %vm44_vm0 = vcmask 130048   ;;  %v42_v0 = vld [vmem:[#allocation5] sm:$0xff]  ;;  %v43_v1 = vld [vmem:[#allocation5 + $0x8] sm:$0xff]  ;;  %s754_s1 = smov [#allocation7]  }
  0x27   :  { %v40_v2 = vld [vmem:[#allocation2] sm:$0xff]  ;;  %v52_v3 = vand.u32 4294901760, %v42_v0  ;;  %v55_v4 = vand.u32 4294901760, %v43_v1  ;;  %v41_v5 = vld [vmem:[#allocation2 + $0x8] sm:$0xff]  ;;  %s560_s6 = sshll.u32 %s754_s1, 4  ;;  %s561_s6 = int_to_ptr.vmem [resolvable:$true] %s560_s6 }
  0x28   :  { %v46_v6 = vsel %vm44_vm0, %v40_v2, 0  ;;  %v49_v7 = vsel %vm44_vm0, %v41_v5, 0  ;;  %s722_s7 = scalar_lea.vmem %s561_s6, 256  ;;  %p727_p3 = scmp.lt.s32.totalorder %s561_s6, %s561_s6 }
  0x29   :  { %v118_v8 = vand.u32 4294901760, %v46_v6  ;;  %v639_v9 = vpack.c.bf16 %v55_v4, %v52_v3  ;;  %v128_v10 = vand.u32 4294901760, %v49_v7  ;;  %v140_v11 = vsub.f32 %v42_v0, %v52_v3  ;;  %p723_p2 = scmp.ne.s32.totalorder %s561_s6, %s722_s7  ;;  %p728_p4 = scmp.lt.s32.totalorder %s722_s7, %s722_s7 }
  0x2a   :  { %v147_v12 = vsub.f32 %v43_v1, %v55_v4 }
  0x2b   :  { %v119_v13 = vsub.f32 %v46_v6, %v118_v8  ;;  %652 = vmatprep.subr.bf16.mxu0 %v639_v9  ;;  %640 = vmatprep.subr.bf16.mxu1 %v639_v9  ;;  %v129_v14 = vsub.f32 %v49_v7, %v128_v10  ;;  %v141_v15 = vand.u32 4294901760, %v140_v11  ;;  %p729_p5 = por %p728_p4, %p727_p3 }
  0x2c   :  { %v148_v16 = vand.u32 4294901760, %v147_v12  ;;  %654 = vmatpush3.bf16.msra.mxu0 %v639_v9  ;;  %642 = vmatpush3.bf16.msra.mxu1 %v639_v9  ;;  %v647_v29 = vpack.c.bf16 %v147_v12, %v140_v11 }
  0x2d   :  { %v120_v17 = vand.u32 4294901760, %v119_v13  ;;  %v130_v18 = vand.u32 4294901760, %v129_v14  ;;  %v142_v19 = vsub.f32 %v140_v11, %v141_v15  ;;  %p730_p6 = pnand %p729_p5, %p723_p2 }
  0x2e   :  { %v149_v20 = vsub.f32 %v147_v12, %v148_v16  ;;  %v655_v21 = vpack.c.bf16 %v148_v16, %v141_v15 }
  0x2f   :  { %622 = vmatprep.mubr.f32.mxu0 %v120_v17  ;;  %v121_v22 = vsub.f32 %v119_v13, %v120_v17  ;;  %v131_v23 = vsub.f32 %v129_v14, %v130_v18  ;;  %v143_v24 = vand.u32 4294901760, %v142_v19 }
  0x30   :  { %623 = vmatmul.mubr.f32.vlgmr.msra.gmra.mrb[0].mxu0 %v130_v18  ;;  %v150_v25 = vand.u32 4294901760, %v149_v20  ;;  %656 = vmatprep.subr.bf16.mxu0 %v655_v21 }
  0x31   :  { %v122_v26 = vand.u32 4294901760, %v121_v22  ;;  %658 = vmatpush3.bf16.msra.mxu0 %v655_v21  ;;  %629 = vmatprep.mubr.f32.mxu0 %v118_v8  ;;  %v132_v27 = vand.u32 4294901760, %v131_v23 }
  0x32   :  { %v643_v28 = vpack.c.bf16 %v150_v25, %v143_v24  ;;  %660 = vmatprep.subr.bf16.mxu0 %v639_v9 }
  0x33   :  { %601 = vmatprep.mubr.f32.mxu1 %v122_v26 }
  0x34   :  { %602 = vmatmul.mubr.f32.vlgmr.msra.gmra.mrb[0].mxu1 %v132_v27  ;;  %644 = vmatprep.subr.bf16.mxu1 %v643_v28 }
  0x35   :  { %646 = vmatpush3.bf16.msra.mxu1 %v643_v28  ;;  %608 = vmatprep.mubr.f32.mxu1 %v118_v8 }
  0x36   :  { %648 = vmatprep.subr.bf16.mxu1 %v647_v29 }
  0x38   :  { %630 = vmatmul.mubr.f32.vlgmr.msra.gmra.mrb[0].mxu0 %v128_v10 }
  0x39   :  { %662 = vmatpush3.bf16.msra.mxu0 %v639_v9  ;;  %636 = vmatprep.mubr.f32.mxu0 %v118_v8 }
  0x3c   :  { %609 = vmatmul.mubr.f32.vlgmr.msra.gmra.mrb[0].mxu1 %v128_v10 }
  0x3d   :  { %650 = vmatpush3.bf16.msra.mxu1 %v647_v29  ;;  %615 = vmatprep.mubr.f32.mxu1 %v119_v13 }
  0x40   :  { %637 = vmatmul.mubr.f32.vlgmr.msra.gmra.mrb[0].mxu0 %v128_v10 }
  0x44   :  { %616 = vmatmul.mubr.f32.vlgmr.msra.gmra.mrb[0].mxu1 %v129_v14 }
 0x113   :  { %v638_v30 = vpop.f32.mrb[0].mxu0 }
 0x114   :  { %v543_v31 = vpop.f32.mrb[1].mxu0 }
 0x117   :  { %v617_v32 = vpop.f32.mrb[0].mxu1 }
 0x118   :  { %v663_v33 = vadd.f32 %v638_v30, %v617_v32  ;;  %v297_v34 = vpop.f32.mrb[1].mxu1 }
 0x119   :  { %v664_v35 = vadd.f32 %v543_v31, %v297_v34 }
 0x11a   :  { %554 = vst [vmem:[#allocation7 + $0x8] sm:$0xff] %v663_v33 }
 0x11b   :  { %553 = vst [vmem:[#allocation7] sm:$0xff] %v664_v35 }
 0x11c   :  { %733 = shalt.err (!%p730_p6)
}
 0x11d   :  { %s734_s10 = scalar_lea.hbm %s817_s2, 256 }
 0x11e   :  { %p735_p7 = scmp.ne.s32.totalorder %s817_s2, %s734_s10  ;;  %p738_p8 = scmp.lt.u32.totalorder %s734_s10, %s817_s2 }
 0x120   :  { %p740_p9 = pnand %p738_p8, %p735_p7 }
 0x122   :  { %743 = shalt.err (!%p740_p9)
}
 0x123   :  { %566 = dma.vmem_to_hbm [thread:$0]  %s561_s6, 256, %s817_s2, [#allocation4], %s751_s19, %s751_s19, %s752_s20  }
 0x124   :  { %748 = dma.done.wait [#allocation4], 256  }
 0x125   :  { %749 = vsyncadd [#allocation4], 4294967040 }
 0x126   :  { %570 = vsyncpa [#allocation3], 1 }
 0x127   :  { %571 = vsyncpa [#allocation6], 1 }
 0x128   :  { %572 = vsyncpa [#allocation4], 1 }

</bundles_post_ra>
